<compile_context>
chip_gen: v7x
topology: tpu7x:2x2x1
jax: 0.10.0
libtpu: 0.0.40
codegen_flags: <defaults>
</compile_context>

<pallas_src>
import jax
import jax.numpy as jnp
from jax import lax
from jax.experimental import pallas as pl
from jax.experimental.pallas import tpu as pltpu


def _round_up(x, m):
    return ((x + m - 1) // m) * m


def _make_kernel(n_valid, tile_rows, tiles_per_part):
    def kernel(x_ref, tgt_ref, mask_ref, num_out_ref, den_out_ref,
               num_acc, den_acc):
        p = pl.program_id(0)      # parallel (megacore) axis
        i = pl.program_id(1)      # sequential row-tile axis

        @pl.when(i == 0)
        def _():
            num_acc[...] = jnp.zeros_like(num_acc)
            den_acc[...] = jnp.zeros_like(den_acc)

        x = x_ref[...].astype(jnp.float32)        # (TM, V) log-probs
        tgt = tgt_ref[...]                         # (TM, 1) i32
        m = mask_ref[...]                          # (TM, 1) f32

        # Valid-row predicate: the HBM slab is unpadded, so the last (and any
        # clamped duplicate) tiles contain garbage rows that must be excluded
        # via select (not via a mask multiply, which would propagate NaN).
        block = p * tiles_per_part + i
        row = block * tile_rows + lax.broadcasted_iota(
            jnp.int32, (tile_rows, 1), 0)
        valid = row < n_valid                      # (TM, 1) bool

        m = jnp.where(valid, m, 0.0)

        # Gather along vocab: select + lane reduction (no one-hot cast/mul).
        col = lax.broadcasted_iota(jnp.int32, x.shape, 1)      # (TM, V)
        picked = jnp.where((col == tgt) & valid, x, 0.0)        # (TM, V)
        gathered = jnp.sum(picked, axis=-1, keepdims=True)      # (TM, 1)

        num_acc[...] += -gathered * m
        den_acc[...] += m

        @pl.when(i == pl.num_programs(1) - 1)
        def _():
            part_num = jnp.sum(num_acc[...], keepdims=True)     # (1, 1)
            part_den = jnp.sum(den_acc[...], keepdims=True)     # (1, 1)
            num_out_ref[...] = jnp.broadcast_to(part_num, num_out_ref.shape)
            den_out_ref[...] = jnp.broadcast_to(part_den, den_out_ref.shape)

    return kernel


def language_model_criterion(inp, target, mask, *, tile_rows=None,
                             n_parallel=2):
    """inp: (B, T, V) float log-probs; target: (B, T_tgt) int; mask: (B, T_tgt)."""
    B, T, V = inp.shape
    target = target[:, :T]
    mask = mask[:, :T]

    n = B * T
    # No dtype cast and no padding of the big slab -> no extra HBM passes.
    x = inp.reshape(n, V)
    t = target.astype(jnp.int32).reshape(n, 1)
    m = mask.astype(jnp.float32).reshape(n, 1)

    itemsize = int(jnp.dtype(x.dtype).itemsize)
    # Sublane packing: f32 -> 8-row alignment, bf16 -> 16, int8/fp8 -> 32.
    row_align = max(8, 32 // max(itemsize, 1))

    if tile_rows is None:
        # Double-buffered input-tile budget; conservative enough for v7x's
        # 64 MiB physical VMEM while still feeding HBM on v5e/v6e.
        input_budget = 40 * 1024 * 1024
        rows = input_budget // (2 * max(V, 1) * itemsize)
        rows = min(rows, _round_up(n, row_align))
        rows = max(row_align, (rows // row_align) * row_align)
        tile_rows = int(rows)
    else:
        tile_rows = int(_round_up(int(tile_rows), row_align))

    n_parallel = max(1, int(n_parallel))
    n_row_tiles = pl.cdiv(n, tile_rows)
    tiles_per_part = pl.cdiv(n_row_tiles, n_parallel)
    last_block = n_row_tiles - 1

    def row_map(p, i):
        # Clamp so DMA offsets never start past the array; the in-kernel
        # valid-row predicate zeroes any duplicated / out-of-range rows.
        return (jnp.minimum(p * tiles_per_part + i, last_block), 0)

    def out_map(p, i):
        return (p, 0)

    kernel = _make_kernel(n, tile_rows, tiles_per_part)

    vmem_needed = (2 * tile_rows * V * itemsize      # x double buffer
                   + 2 * 2 * tile_rows * (4 + 4)     # t/m double buffers
                   + 2 * tile_rows * 4               # accumulators
                   + (2 << 20))                      # outputs + headroom
    vmem_limit = int(min(max(vmem_needed, 32 * 1024 * 1024),
                         56 * 1024 * 1024))

    num_parts, den_parts = pl.pallas_call(
        kernel,
        out_shape=(
            jax.ShapeDtypeStruct((n_parallel * 8, 128), jnp.float32),
            jax.ShapeDtypeStruct((n_parallel * 8, 128), jnp.float32),
        ),
        grid_spec=pltpu.PrefetchScalarGridSpec(
            num_scalar_prefetch=0,
            grid=(n_parallel, tiles_per_part),
            in_specs=[
                pl.BlockSpec((tile_rows, V), row_map),
                pl.BlockSpec((tile_rows, 1), row_map),
                pl.BlockSpec((tile_rows, 1), row_map),
            ],
            out_specs=[
                pl.BlockSpec((8, 128), out_map),
                pl.BlockSpec((8, 128), out_map),
            ],
            scratch_shapes=[
                pltpu.VMEM((tile_rows, 1), jnp.float32),   # numerator partial
                pltpu.VMEM((tile_rows, 1), jnp.float32),   # denominator partial
            ],
        ),
        compiler_params=pltpu.CompilerParams(
            dimension_semantics=("parallel", "arbitrary"),
            vmem_limit_bytes=vmem_limit,
        ),
    )(x, t, m)

    # Each (8, 128) output block is a broadcast of one per-slice partial sum.
    num = jnp.sum(num_parts[::8, 0])
    den = jnp.sum(den_parts[::8, 0])
    return num / den   # inf/nan if sum(mask) == 0, matching the reference


def _reference(inp, target, mask):
    B, T, V = inp.shape
    target = target[:, :T]
    mask = mask[:, :T].astype(jnp.float32)
    gathered = jnp.take_along_axis(
        inp.astype(jnp.float32), target[..., None].astype(jnp.int32), axis=2
    )[..., 0]
    num = jnp.sum(-gathered * mask)
    den = jnp.sum(mask)
    return num / den


if __name__ == "__main__":
    key = jax.random.PRNGKey(0)
    k1, k2, k3 = jax.random.split(key, 3)

    B, T, V = 2, 8, 32
    T_tgt = 10  # longer than T to exercise the truncation path

    logits = jax.random.normal(k1, (B, T, V), dtype=jnp.float32)
    inp = jax.nn.log_softmax(logits, axis=-1)                     # (B, T, V)
    target = jax.random.randint(k2, (B, T_tgt), 0, V, jnp.int32)  # (B, T_tgt)
    mask = (jax.random.uniform(k3, (B, T_tgt)) > 0.3).astype(jnp.float32)
    # guarantee a nonzero denominator
    mask = mask.at[0, 0].set(1.0)

    out = language_model_criterion(inp, target, mask)
    out = jax.block_until_ready(out)

    ref = _reference(inp, target, mask)
    assert jnp.allclose(out, ref, rtol=1e-5, atol=1e-6), (out, ref)
    print("KERNEL_OK")
</pallas_src>

<mosaic_0001>
module attributes {stable_mosaic.version = 11 : i64} {
  func.func @kernel(%arg0: i32, %arg1: i32, %arg2: memref<16x32xf32, #tpu.memory_space<vmem>>, %arg3: memref<16x1xi32, #tpu.memory_space<vmem>>, %arg4: memref<16x1xf32, #tpu.memory_space<vmem>>, %arg5: memref<8x128xf32, #tpu.memory_space<vmem>>, %arg6: memref<8x128xf32, #tpu.memory_space<vmem>>, %arg7: memref<16x1xf32, #tpu.memory_space<vmem>>, %arg8: memref<16x1xf32, #tpu.memory_space<vmem>>) attributes {dimension_semantics = [#tpu.dimension_semantics<parallel>, #tpu.dimension_semantics<arbitrary>], iteration_bounds = array<i64: 2, 1>, scalar_prefetch = 0 : i64, scratch_operands = 2 : i64, tpu.core_type = #tpu.core_type<tc>, window_params = [{transform_indices = @transform_0, window_bounds = array<i64: 16, 32>}, {transform_indices = @transform_1, window_bounds = array<i64: 16, 1>}, {transform_indices = @transform_2, window_bounds = array<i64: 16, 1>}, {transform_indices = @transform_3, window_bounds = array<i64: 8, 128>}, {transform_indices = @transform_4, window_bounds = array<i64: 8, 128>}]} {
    %c0_i32 = arith.constant 0 : i32
    %0 = arith.cmpi eq, %arg1, %c0_i32 : i32
    %1 = arith.extui %0 : i1 to i32
    %c0_i32_0 = arith.constant 0 : i32
    %2 = arith.cmpi ne, %1, %c0_i32_0 : i32
    scf.if %2 {
      %cst_20 = arith.constant 0.000000e+00 : f32
      %37 = vector.broadcast %cst_20 : f32 to vector<16x1xf32>
      %c0_21 = arith.constant 0 : index
      %c0_22 = arith.constant 0 : index
      %38 = vector.load %arg7[%c0_21, %c0_22] : memref<16x1xf32, #tpu.memory_space<vmem>>, vector<16x1xf32>
      tpu.vector_store %arg7[%c0_21, %c0_22], %37 {strides = array<i32>} : memref<16x1xf32, #tpu.memory_space<vmem>>, vector<16x1xf32>,
      %cst_23 = arith.constant 0.000000e+00 : f32
      %39 = vector.broadcast %cst_23 : f32 to vector<16x1xf32>
      %c0_24 = arith.constant 0 : index
      %c0_25 = arith.constant 0 : index
      %40 = vector.load %arg8[%c0_24, %c0_25] : memref<16x1xf32, #tpu.memory_space<vmem>>, vector<16x1xf32>
      tpu.vector_store %arg8[%c0_24, %c0_25], %39 {strides = array<i32>} : memref<16x1xf32, #tpu.memory_space<vmem>>, vector<16x1xf32>,
    } else {
    }
    %c0 = arith.constant 0 : index
    %c0_1 = arith.constant 0 : index
    %3 = vector.load %arg2[%c0, %c0_1] : memref<16x32xf32, #tpu.memory_space<vmem>>, vector<16x32xf32>
    %c0_2 = arith.constant 0 : index
    %c0_3 = arith.constant 0 : index
    %4 = vector.load %arg3[%c0_2, %c0_3] : memref<16x1xi32, #tpu.memory_space<vmem>>, vector<16x1xi32>
    %c0_4 = arith.constant 0 : index
    %c0_5 = arith.constant 0 : index
    %5 = vector.load %arg4[%c0_4, %c0_5] : memref<16x1xf32, #tpu.memory_space<vmem>>, vector<16x1xf32>
    %c1_i32 = arith.constant 1 : i32
    %6 = arith.muli %arg0, %c1_i32 : i32
    %7 = arith.addi %6, %arg1 : i32
    %c16_i32 = arith.constant 16 : i32
    %8 = arith.muli %7, %c16_i32 : i32
    %9 = tpu.iota {dimensions = array<i32: 0>} : vector<16x1xi32>
    %10 = vector.broadcast %8 : i32 to vector<16x1xi32>
    %11 = arith.addi %10, %9 : vector<16x1xi32>
    %c16_i32_6 = arith.constant 16 : i32
    %12 = vector.broadcast %c16_i32_6 : i32 to vector<16x1xi32>
    %13 = arith.cmpi slt, %11, %12 : vector<16x1xi32>
    %cst = arith.constant 0.000000e+00 : f32
    %14 = vector.broadcast %cst : f32 to vector<16x1xf32>
    %15 = arith.select %13, %5, %14 : vector<16x1xi1>, vector<16x1xf32>
    %16 = tpu.iota {dimensions = array<i32: 1>} : vector<16x32xi32>
    %17 = vector.broadcast %4 : vector<16x1xi32> to vector<16x32xi32>
    %18 = arith.cmpi eq, %16, %17 : vector<16x32xi32>
    %19 = vector.broadcast %13 : vector<16x1xi1> to vector<16x32xi1>
    %20 = arith.andi %18, %19 : vector<16x32xi1>
    %cst_7 = arith.constant 0.000000e+00 : f32
    %21 = vector.broadcast %cst_7 : f32 to vector<16x32xf32>
    %22 = arith.select %20, %3, %21 : vector<16x32xi1>, vector<16x32xf32>
    %cst_8 = arith.constant dense<0.000000e+00> : vector<16xf32>
    %23 = vector.multi_reduction <add>, %22, %cst_8 [1] : vector<16x32xf32> to vector<16xf32>
    %24 = vector.shape_cast %23 : vector<16xf32> to vector<16x1xf32>
    %c0_9 = arith.constant 0 : index
    %c0_10 = arith.constant 0 : index
    %25 = vector.load %arg7[%c0_9, %c0_10] : memref<16x1xf32, #tpu.memory_space<vmem>>, vector<16x1xf32>
    %cst_11 = arith.constant 0.000000e+00 : f32
    %26 = vector.broadcast %cst_11 : f32 to vector<16x1xf32>
    %27 = arith.subf %26, %24 : vector<16x1xf32>
    %28 = arith.mulf %27, %15 : vector<16x1xf32>
    %29 = arith.addf %25, %28 : vector<16x1xf32>
    %c0_12 = arith.constant 0 : index
    %c0_13 = arith.constant 0 : index
    %30 = vector.load %arg7[%c0_12, %c0_13] : memref<16x1xf32, #tpu.memory_space<vmem>>, vector<16x1xf32>
    tpu.vector_store %arg7[%c0_12, %c0_13], %29 {strides = array<i32>} : memref<16x1xf32, #tpu.memory_space<vmem>>, vector<16x1xf32>,
    %c0_14 = arith.constant 0 : index
    %c0_15 = arith.constant 0 : index
    %31 = vector.load %arg8[%c0_14, %c0_15] : memref<16x1xf32, #tpu.memory_space<vmem>>, vector<16x1xf32>
    %32 = arith.addf %31, %15 : vector<16x1xf32>
    %c0_16 = arith.constant 0 : index
    %c0_17 = arith.constant 0 : index
    %33 = vector.load %arg8[%c0_16, %c0_17] : memref<16x1xf32, #tpu.memory_space<vmem>>, vector<16x1xf32>
    tpu.vector_store %arg8[%c0_16, %c0_17], %32 {strides = array<i32>} : memref<16x1xf32, #tpu.memory_space<vmem>>, vector<16x1xf32>,
    %c0_i32_18 = arith.constant 0 : i32
    %34 = arith.cmpi eq, %arg1, %c0_i32_18 : i32
    %35 = arith.extui %34 : i1 to i32
    %c0_i32_19 = arith.constant 0 : i32
    %36 = arith.cmpi ne, %35, %c0_i32_19 : i32
    scf.if %36 {
      %c0_20 = arith.constant 0 : index
      %c0_21 = arith.constant 0 : index
      %37 = vector.load %arg7[%c0_20, %c0_21] : memref<16x1xf32, #tpu.memory_space<vmem>>, vector<16x1xf32>
      %38 = vector.shape_cast %37 : vector<16x1xf32> to vector<1x16x1xf32>
      %cst_22 = arith.constant dense<0.000000e+00> : vector<1xf32>
      %39 = vector.multi_reduction <add>, %38, %cst_22 [1, 2] : vector<1x16x1xf32> to vector<1xf32>
      %40 = vector.shape_cast %39 : vector<1xf32> to vector<1x1x1xf32>
      %41 = vector.extract %40[0, 0, 0] : f32 from vector<1x1x1xf32>
      %42 = vector.broadcast %41 : f32 to vector<1x1xf32>
      %c0_23 = arith.constant 0 : index
      %c0_24 = arith.constant 0 : index
      %43 = vector.load %arg8[%c0_23, %c0_24] : memref<16x1xf32, #tpu.memory_space<vmem>>, vector<16x1xf32>
      %44 = vector.shape_cast %43 : vector<16x1xf32> to vector<1x16x1xf32>
      %cst_25 = arith.constant dense<0.000000e+00> : vector<1xf32>
      %45 = vector.multi_reduction <add>, %44, %cst_25 [1, 2] : vector<1x16x1xf32> to vector<1xf32>
      %46 = vector.shape_cast %45 : vector<1xf32> to vector<1x1x1xf32>
      %47 = vector.extract %46[0, 0, 0] : f32 from vector<1x1x1xf32>
      %48 = vector.broadcast %47 : f32 to vector<1x1xf32>
      %49 = vector.shape_cast %42 : vector<1x1xf32> to vector<1x1xf32>
      %50 = vector.broadcast %49 : vector<1x1xf32> to vector<8x128xf32>
      %c0_26 = arith.constant 0 : index
      %c0_27 = arith.constant 0 : index
      %51 = vector.load %arg5[%c0_26, %c0_27] : memref<8x128xf32, #tpu.memory_space<vmem>>, vector<8x128xf32>
      tpu.vector_store %arg5[%c0_26, %c0_27], %50 {strides = array<i32>} : memref<8x128xf32, #tpu.memory_space<vmem>>, vector<8x128xf32>,
      %52 = vector.shape_cast %48 : vector<1x1xf32> to vector<1x1xf32>
      %53 = vector.broadcast %52 : vector<1x1xf32> to vector<8x128xf32>
      %c0_28 = arith.constant 0 : index
      %c0_29 = arith.constant 0 : index
      %54 = vector.load %arg6[%c0_28, %c0_29] : memref<8x128xf32, #tpu.memory_space<vmem>>, vector<8x128xf32>
      tpu.vector_store %arg6[%c0_28, %c0_29], %53 {strides = array<i32>} : memref<8x128xf32, #tpu.memory_space<vmem>>, vector<8x128xf32>,
    } else {
    }
    return
  }
  func.func @transform_0(%arg0: i32, %arg1: i32) -> (i32, i32) {
    %c1_i32 = arith.constant 1 : i32
    %0 = arith.muli %arg0, %c1_i32 : i32
    %1 = arith.addi %0, %arg1 : i32
    %c0_i32 = arith.constant 0 : i32
    %2 = arith.minsi %1, %c0_i32 : i32
    %c0_i32_0 = arith.constant 0 : i32
    %c0_i32_1 = arith.constant 0 : i32
    return %2, %c0_i32_0 : i32, i32
  }
  func.func @transform_1(%arg0: i32, %arg1: i32) -> (i32, i32) {
    %c1_i32 = arith.constant 1 : i32
    %0 = arith.muli %arg0, %c1_i32 : i32
    %1 = arith.addi %0, %arg1 : i32
    %c0_i32 = arith.constant 0 : i32
    %2 = arith.minsi %1, %c0_i32 : i32
    %c0_i32_0 = arith.constant 0 : i32
    %c0_i32_1 = arith.constant 0 : i32
    return %2, %c0_i32_0 : i32, i32
  }
  func.func @transform_2(%arg0: i32, %arg1: i32) -> (i32, i32) {
    %c1_i32 = arith.constant 1 : i32
    %0 = arith.muli %arg0, %c1_i32 : i32
    %1 = arith.addi %0, %arg1 : i32
    %c0_i32 = arith.constant 0 : i32
    %2 = arith.minsi %1, %c0_i32 : i32
    %c0_i32_0 = arith.constant 0 : i32
    %c0_i32_1 = arith.constant 0 : i32
    return %2, %c0_i32_0 : i32, i32
  }
  func.func @transform_3(%arg0: i32, %arg1: i32) -> (i32, i32) {
    %c0_i32 = arith.constant 0 : i32
    %c0_i32_0 = arith.constant 0 : i32
    return %arg0, %c0_i32 : i32, i32
  }
  func.func @transform_4(%arg0: i32, %arg1: i32) -> (i32, i32) {
    %c0_i32 = arith.constant 0 : i32
    %c0_i32_0 = arith.constant 0 : i32
    return %arg0, %c0_i32 : i32, i32
  }
}

</mosaic_0001>

<bundles_post_ra>
// kernel: tpu_custom_call.1
= control target key start
LH: loop header
LB: loop body
LE: loop exit
PB: predicated region body
PF: predicated region fallthrough
CT: control target
= control target key end

     0   :  { %10 = vsyncpa [#allocation5], 0  ;;  %s983_s0 = inlined_call_operand.vmem [shape: f32[16,32], index: 0, kind: input, shape index: {}]   ;;  %s984_s1 = inlined_call_operand.vmem [shape: s32[16,1], index: 1, kind: input, shape index: {}]   ;;  %s985_s2 = inlined_call_operand.vmem [shape: f32[16,1], index: 2, kind: input, shape index: {}]   ;;  %s986_s3 = inlined_call_operand.hbm [shape: f32[16,128], index: 3, kind: output, shape index: {0}]   ;;  %s987_s4 = inlined_call_operand.hbm [shape: f32[16,128], index: 4, kind: output, shape index: {1}]  }
   0x1   :  { %12 = vsyncpa [#allocation5 + $0x1], 0 }
   0x2   :  { %13 = vsyncpa [#allocation7], 0 }
   0x3   :  { %15 = vsyncpa [#allocation7 + $0x1], 0  ;;  %s815_s15 = smov 0   ;;  %s817_s16 = smov 0  }
   0x4   :  { %s819_s17 = smov 0   ;;  %s821_s18 = smov 0  }
   0x5   :  { %s823_s19 = smov 0   ;;  %s825_s20 = smov 0  }
   0x6 LB: > { %s587_s21 = sadd.s32 4294967295, %s784_s20   ;;  %s588_s22 = sadd.s32 4294967294, %s784_s20   ;;  %s784_s20 = sphi %s825_s20, %s21_s20   ;;  %s780_s19 = sphi %s823_s19, %s994_s19   ;;  %s776_s18 = sphi %s821_s18, %s993_s18   ;;  %s772_s17 = sphi %s819_s17, %s992_s17   ;;  %s768_s16 = sphi %s817_s16, %s991_s16   ;;  %s764_s15 = sphi %s815_s15, %s990_s15  }
   0x7   : > { %s33_s23 = sadd.s32 1, %s780_s19  ;;  %s136_s24 = sadd.s32 1, %s772_s17 }
   0x8   : > { %p35_p0 = scmp.ge.s32.totalorder %s33_s23, 2  ;;  %p146_p1 = scmp.ne.s32.totalorder %s772_s17, %s768_s16 }
   0x9   : > { %p147_p2 = scmp.eq.s32.totalorder %s587_s21, 1  ;;  %p152_p3 = scmp.ne.s32.totalorder %s768_s16, %s764_s15 }
   0xa   : > { %s996_s23 = smov (%p35_p0, %s33_s23), 0  ;;  %p153_p5 = scmp.eq.s32.totalorder %s588_s22, 1 }
   0xb   : > { %p855_p4 = por %p147_p2, %p146_p1  ;;  %s133_s26 = ssub.s32 %s780_s19, %s996_s23 }
   0xc   : > { %p591_p6 = scmp.ge.s32.totalorder %s784_s20, 1  ;;  %p134_p7 = scmp.eq.s32.totalorder %s133_s26, 0 }
   0xd   : > { %p862_p8 = por %p153_p5, %p152_p3  ;;  %p242_p9 = scmp.lt.s32.totalorder %s784_s20, 3 }
   0xe   : > { %s868_s28 = scalar_select %p134_p7, %s772_s17, %s136_s24  }
   0xf   : > { %p243_p10 = pnand %p591_p6, %p242_p9 }
  0x10   : > { %p293_p11 = scmp.lt.s32.totalorder (!%p243_p10), %s776_s18, 0  ;;  %v786_v0 = vmov (!%p243_p10), 0   ;;  %v345_v1 = vlaneseq (!%p243_p10)  ;;  %s600_s9 = sshll.u32 (!%p243_p10), %s776_s18, 4  ;;  %vm332_vm0 = vcmask (!%p243_p10), 7168   ;;  %v787_v9 = vmov (!%p243_p10), 0.0  }
  0x11   : > { %246 = sbr.rel (%p243_p10) target bundleno = 571 (0x23b), region = 32  ;;  %673 = vset.pattern.permute.xlu0 (!%p243_p10), %v786_v0  ;;  %v348_v6 = vstv (!%p243_p10), %s600_s9  ;;  %333 = vst.msk [vmem:[#allocation2] sm:$0xff] (!%p243_p10), %vm332_vm0, %v787_v9  ;;  %335 = vst.msk [vmem:[#allocation3] sm:$0xff] (!%p243_p10), %vm332_vm0, %v787_v9  ;;  %vm373_vm3 = vcmask (!%p243_p10), 261120   ;;  %s899_s22 = sand.u32 (!%p243_p10), 1, %s768_s16  }
  0x12   : > { %v346_v2 = vshrl.u32 (!%p243_p10), %v345_v1, 7  ;;  %334 = vst.msk [vmem:[#allocation2 + $0x8] sm:$0xff] (!%p243_p10), %vm332_vm0, %v787_v9  ;;  %336 = vst.msk [vmem:[#allocation3 + $0x8] sm:$0xff] (!%p243_p10), %vm332_vm0, %v787_v9  ;;  %v356_v14 = vand.u32 (!%p243_p10), 127, %v345_v1  ;;  %s592_s24 = sshll.u32 (!%p243_p10), %s899_s22, 3  ;;  %s603_s6 = sshll.u32 (!%p243_p10), %s776_s18, 7 }
  0x13   : > { %s291_s26 = scalar_lea.vmem (!%p243_p10), [#allocation6], %s592_s24  ;;  %s908_s9 = scalar_lea.hbm (!%p243_p10), %s986_s3, %s603_s6 }
  0x14   : > { %v347_v4 = vadd.s32 (!%p243_p10), 8, %v346_v2  ;;  %v349_v8 = vadd.s32 (!%p243_p10), %v348_v6, %v346_v2  ;;  %s915_s14 = scalar_lea.hbm (!%p243_p10), %s987_s4, %s603_s6 }
  0x16   : > { %v350_v7 = vadd.s32 (!%p243_p10), %v348_v6, %v347_v4  ;;  %vm351_vm1 = vcmp.lt.s32.totalorder (!%p243_p10), %v349_v8, 16 }
  0x18   : > { %s294_s29 = scalar_select %p293_p11, %s776_s18, 0  ;;  %v391_v12 = vld [vmem:[#allocation3] sm:$0xff]  ;;  %vm352_vm5 = vcmp.lt.s32.totalorder %v350_v7, 16  ;;  %v380_v34 = vld [vmem:[#allocation2] sm:$0xff] }
  0x19   : > { %v392_v25 = vld [vmem:[#allocation3 + $0x8] sm:$0xff]  ;;  %v381_v39 = vld [vmem:[#allocation2 + $0x8] sm:$0xff]  ;;  %s433_s18 = scalar_lea.sflag [#allocation5], %s899_s22 }
  0x1a   : > { %s594_s30 = sshll.u32 %s294_s29, 1  ;;  %s464_s29 = sshll.u32 %s291_s26, 4  ;;  %s903_s29 = int_to_ptr.vmem [resolvable:$true] %s464_s29 }
  0x1b   : > { %p296_p12 = scmp.lt.s32.totalorder %s594_s30, 1 }
  0x1d   : > { %s998_s30 = smov (!%p296_p12, %s594_s30), 1 }
  0x1e   : > { %s595_s5 = sshll.u32 %s998_s30, 3  ;;  %s284_s30 = scalar_lea.vmem [#allocation4], %s592_s24 }
  0x1f   : > { %s311_s8 = scalar_lea.vmem %s984_s1, %s595_s5  ;;  %s879_s12 = scalar_lea.vmem %s985_s2, %s595_s5 }
  0x20   : > { %v339_v3 = vld [vmem:[%s311_s8] sm:$0xff]  ;;  %v340_v5 = vld [vmem:[%s311_s8 + $0x8] sm:$0xff]  ;;  %s299_s21 = scalar_lea.vmem %s983_s0, %s595_s5  ;;  %s451_s5 = sshll.u32 %s284_s30, 4  ;;  %s910_s5 = int_to_ptr.vmem [resolvable:$true] %s451_s5 }
  0x21   : > { %358 = vperm.xlu0 %673, %v339_v3   ;;  %v341_v10 = vld [vmem:[%s879_s12] sm:$0xff]  ;;  %v338_v20 = vld [vmem:[%s299_s21 + $0x8] sm:$0xff]  ;;  %s788_s24 = smov [#allocation4]  }
  0x22   : > { %v353_v11 = vsel %vm351_vm1, %v341_v10, 0.0  ;;  %v337_v16 = vld [vmem:[%s299_s21] sm:$0xff]  ;;  %v342_v23 = vld [vmem:[%s879_s12 + $0x8] sm:$0xff]  ;;  %s674_s21 = scalar_lea.vmem %s910_s5, 128  ;;  %s678_s7 = sshll.u32 %s788_s24, 4  ;;  %s679_s7 = int_to_ptr.vmem [resolvable:$false] %s678_s7 }
  0x23   : > { %v393_v13 = vadd.f32 %v391_v12, %v353_v11  ;;  %v354_v24 = vsel %vm352_vm5, %v342_v23, 0.0  ;;  %p675_p13 = scmp.ne.s32.totalorder %s910_s5, %s674_s21  ;;  %s680_s8 = scalar_lea.vmem %s679_s7, 256 }
  0x24   : > { %v394_v26 = vadd.f32 %v392_v25, %v354_v24  ;;  %p681_p2 = scmp.lt.s32.totalorder %s910_s5, %s679_s7  ;;  %p682_p3 = scmp.lt.s32.totalorder %s680_s8, %s674_s21 }
  0x25   : > { %361 = vperm.xlu0 %673, %v340_v5   ;;  %395 = vst.msk [vmem:[#allocation3] sm:$0xff] %vm332_vm0, %v393_v13  ;;  %p676_p0 = pnand %p675_p13, %p855_p4 }
  0x26   : > { %396 = vst.msk [vmem:[#allocation3 + $0x8] sm:$0xff] %vm332_vm0, %v394_v26  ;;  %p683_p5 = por %p682_p3, %p681_p2 }
  0x27   : > { %p677_p1 = pneg %p676_p0 }
  0x29   : > { %p684_p6 = pnand %p683_p5, %p677_p1 }
  0x2c   : > { %v414_v27 = vld [vmem:[#allocation3] sm:$0xff] }
  0x2d   : > { %v415_v28 = vld [vmem:[#allocation3 + $0x8] sm:$0xff]  ;;  %v416_v29 = vsel %vm332_vm0, %v414_v27, 0.0 }
  0x2e   : > { %v417_v30 = vsel %vm332_vm0, %v415_v28, 0.0 }
  0x2f   : > { %v418_v31 = vadd.f32 %v417_v30, %v416_v29 }
  0xa0   : > { %v359_v15 = vpop.permute.xlu0 %358 }
  0xa1   : > { %vm363_vm2 = vcmp.eq.s32.totalorder %v356_v14, %v359_v15 }
  0xa2   : > { %vm369_vm4 = vmand %vm363_vm2, %vm351_vm1 }
  0xa3   : > { %v371_v17 = vsel %vm369_vm4, %v337_v16, 0.0 }
  0xa4   : > { %v362_v18 = vpop.permute.xlu0 %361  ;;  %v374_v19 = vsel %vm373_vm3, %v371_v17, 0.0 }
  0xa5   : > { %vm364_vm6 = vcmp.eq.s32.totalorder %v356_v14, %v362_v18  ;;  %375 = vadd.xlane.f32.xlu1 %v374_v19 }
  0xa6   : > { %vm370_vm7 = vmand %vm364_vm6, %vm352_vm5 }
  0xa7   : > { %v372_v21 = vsel %vm370_vm7, %v338_v20, 0.0 }
  0xa8   : > { %v377_v22 = vsel %vm373_vm3, %v372_v21, 0.0 }
  0xa9   : > { %378 = vadd.xlane.f32.xlu1 %v377_v22 }
  0xad   : > { %419 = vadd.xlane.f32.xlu1 %v418_v31 }
 0x132   : > { %v376_v32 = vpop.xlane.xlu1 %375 }
 0x133   : > { %v382_v33 = vsub.f32 0.0, %v376_v32 }
 0x135   : > { %v384_v35 = vmul.f32 %v382_v33, %v353_v11 }
 0x136   : > { %v379_v36 = vpop.xlane.xlu1 %378 }
 0x137   : > { %v386_v37 = vadd.f32 %v384_v35, %v380_v34  ;;  %v383_v38 = vsub.f32 0.0, %v379_v36 }
 0x139   : > { %389 = vst.msk [vmem:[#allocation2] sm:$0xff] %vm332_vm0, %v386_v37  ;;  %v385_v40 = vmul.f32 %v383_v38, %v354_v24 }
 0x13a   : > { %v420_v47 = vpop.xlane.xlu1 %419 }
 0x13b   : > { %v387_v41 = vadd.f32 %v385_v40, %v381_v39  ;;  %v421_v48 = vrot.slane %v420_v47, 4 }
 0x13d   : > { %390 = vst.msk [vmem:[#allocation2 + $0x8] sm:$0xff] %vm332_vm0, %v387_v41  ;;  %v422_v49 = vadd.f32 %v421_v48, %v420_v47 }
 0x13f   : > { %v423_v50 = vrot.slane %v422_v49, 2 }
 0x140   : > { %v400_v42 = vld [vmem:[#allocation2] sm:$0xff] }
 0x141   : > { %v402_v44 = vsel %vm332_vm0, %v400_v42, 0.0  ;;  %v424_v54 = vadd.f32 %v423_v50, %v422_v49 }
 0x143   : > { %v425_v57 = vrot.slane %v424_v54, 1 }
 0x144   : > { %v401_v43 = vld [vmem:[#allocation2 + $0x8] sm:$0xff] }
 0x145   : > { %v403_v45 = vsel %vm332_vm0, %v401_v43, 0.0  ;;  %v426_v60 = vadd.f32 %v425_v57, %v424_v54 }
 0x146   : > { %v404_v46 = vadd.f32 %v403_v45, %v402_v44 }
 0x148   : > { %405 = vadd.xlane.f32.xlu0 %v404_v46 }
 0x1d5   : > { %v406_v51 = vpop.xlane.xlu0 %405 }
 0x1d6   : > { %v407_v52 = vrot.slane %v406_v51, 4 }
 0x1d8   : > { %v408_v53 = vadd.f32 %v407_v52, %v406_v51 }
 0x1da   : > { %v409_v55 = vrot.slane %v408_v53, 2 }
 0x1dc   : > { %v410_v56 = vadd.f32 %v409_v55, %v408_v53 }
 0x1de   : > { %v411_v58 = vrot.slane %v410_v56, 1 }
 0x1e0   : > { %v412_v59 = vadd.f32 %v411_v58, %v410_v56 }
 0x1e2   : > { %607 = vpush %v412_v59 }
 0x1e3   : > { %609 = vpush %v426_v60 }
 0x213   : > { %s608_s10 = spop %607 }
 0x214   : > { %v428_v61 = vstv %s608_s10  ;;  %s610_s11 = spop %609 }
 0x215   : > { %429 = vst [vmem:[%s284_s30] sm:$0xff] %v428_v61  ;;  %v430_v62 = vstv %s610_s11 }
 0x216   : > { %431 = vst [vmem:[%s291_s26] sm:$0xff] %v430_v62 }
 0x217   : > { %687 = shalt.err (!%p684_p6)
}
 0x218   : > { %s688_s26 = scalar_lea.hbm %s908_s9, 128  ;;  %s692_s10 = scalar_lea.hbm %s986_s3, 256 }
 0x219   : > { %p689_p7 = scmp.ne.s32.totalorder %s908_s9, %s688_s26  ;;  %p693_p11 = scmp.lt.u32.totalorder %s908_s9, %s986_s3 }
 0x21a   : > { %p694_p12 = scmp.lt.u32.totalorder %s692_s10, %s688_s26  ;;  %p696_p0 = scmp.lt.u32.totalorder %s688_s26, %s908_s9 }
 0x21b   : > { %p690_p9 = pnand %p689_p7, %p855_p4 }
 0x21c   : > { %p695_p13 = por %p694_p12, %p693_p11 }
 0x21d   : > { %p691_p10 = pneg %p690_p9 }
 0x21e   : > { %p697_p1 = por %p696_p0, %p695_p13 }
 0x220   : > { %p698_p2 = pnand %p697_p1, %p691_p10 }
 0x222   : > { %701 = shalt.err (!%p698_p2)
}
 0x223   : > { %611 = dma.vmem_to_hbm [thread:$0]  (%p855_p4), %s910_s5, 128, %s908_s9, %s433_s18  }
 0x224   : > { %s438_s13 = scalar_lea.sflag [#allocation7], %s899_s22  ;;  %s702_s21 = scalar_lea.vmem %s903_s29, 128 }
 0x225   : > { %p703_p3 = scmp.ne.s32.totalorder %s903_s29, %s702_s21  ;;  %s789_s24 = smov [#allocation6]  }
 0x226   : > { %s706_s7 = sshll.u32 %s789_s24, 4  ;;  %s707_s7 = int_to_ptr.vmem [resolvable:$false] %s706_s7 }
 0x227   : > { %p704_p5 = pnand %p703_p3, %p855_p4  ;;  %s708_s8 = scalar_lea.vmem %s707_s7, 256 }
 0x228   : > { %p709_p7 = scmp.lt.s32.totalorder %s903_s29, %s707_s7  ;;  %p710_p9 = scmp.lt.s32.totalorder %s708_s8, %s702_s21 }
 0x229   : > { %p705_p6 = pneg %p704_p5 }
 0x22a   : > { %p711_p10 = por %p710_p9, %p709_p7 }
 0x22c   : > { %p712_p11 = pnand %p711_p10, %p705_p6 }
 0x22e   : > { %715 = shalt.err (!%p712_p11)
}
 0x22f   : > { %s716_s22 = scalar_lea.hbm %s915_s14, 128  ;;  %s720_s18 = scalar_lea.hbm %s987_s4, 256 }
 0x230   : > { %p717_p12 = scmp.ne.s32.totalorder %s915_s14, %s716_s22  ;;  %p721_p1 = scmp.lt.u32.totalorder %s915_s14, %s987_s4 }
 0x231   : > { %p722_p2 = scmp.lt.u32.totalorder %s720_s18, %s716_s22  ;;  %p724_p5 = scmp.lt.u32.totalorder %s716_s22, %s915_s14 }
 0x232   : > { %p718_p13 = pnand %p717_p12, %p855_p4 }
 0x233   : > { %p723_p3 = por %p722_p2, %p721_p1 }
 0x234   : > { %p719_p0 = pneg %p718_p13 }
 0x235   : > { %p725_p6 = por %p724_p5, %p723_p3 }
 0x237   : > { %p726_p7 = pnand %p725_p6, %p719_p0 }
 0x239   : > { %729 = shalt.err (!%p726_p7)
}
 0x23a   : > { %612 = dma.vmem_to_hbm [thread:$0]  (%p855_p4), %s903_s29, 128, %s915_s14, %s438_s13  }
 0x23b PF: > { %p622_p9 = scmp.ge.s32.totalorder %s784_s20, 2  ;;  %s476_s6 = sand.u32 1, %s764_s15  }
 0x23c   : > { %s477_s10 = scalar_lea.sflag [#allocation5], %s476_s6 }
 0x23d   : > { %p616_p10 = pnand %p622_p9, %p862_p8 }
 0x23f   : > { %755 = dma.done.wait (!%p616_p10), %s477_s10, 128  }
 0x240   : > { %757 = vsyncadd (!%p616_p10), %s477_s10, 4294967168  ;;  %s486_s11 = scalar_lea.sflag [#allocation7], %s476_s6 }
 0x241   : > { %759 = dma.done.wait (!%p616_p10), %s486_s11, 128  }
 0x242   : > { %761 = vsyncadd (!%p616_p10), %s486_s11, 4294967168  ;;  %s21_s20 = sadd.s32 1, %s784_s20   ;;  %s990_s15 = smov %s768_s16 }
 0x243   : > { %p18_p11 = scmp.ge.s32.totalorder %s21_s20, 4   ;;  %s991_s16 = smov %s772_s17 }
 0x244   : > { %s992_s17 = smov %s868_s28  ;;  %s993_s18 = smov %s780_s19 }
 0x245   : > { %s994_s19 = smov %s996_s23  ;;  %20 = sbr.rel (!%p18_p11) target bundleno = 6 (0x6), region = 98 }
 0x24c   :  { %491 = vsyncpa [#allocation5], 1 }
 0x24d   :  { %493 = vsyncpa [#allocation5 + $0x1], 1 }
 0x24e   :  { %494 = vsyncpa [#allocation7], 1 }
 0x24f   :  { %496 = vsyncpa [#allocation7 + $0x1], 1 }

</bundles_post_ra>
